<compile_context>
chip_gen: v5e
topology: v5e:2x2
jax: 0.10.0
libtpu: 0.0.40
codegen_flags: <defaults>
</compile_context>

<pallas_src>
import functools

import jax
import jax.numpy as jnp
from jax.experimental import pallas as pl
from jax.experimental.pallas import tpu as pltpu


_SINGLE_K_MAX = 512           # K <= this -> single full-K block, no accumulator
_VMEM_CAP = 48 * 1024 * 1024  # stay under v7x's 64 MiB/TC VMEM


def _round_up(n: int, m: int) -> int:
    return ((n + m - 1) // m) * m


def _choose_tm(batch: int, compute_dtype) -> int:
    """Row tile: pick TM first, then pad M to a multiple of TM (never 8-row tiles)."""
    sub = 16 if jnp.dtype(compute_dtype).itemsize == 2 else 8
    if batch <= 128:
        return min(_round_up(batch, sub), 128)
    if batch <= 4096:
        return 128   # >= 2 M blocks at B >= 256 -> both v7x TensorCores get work
    return 256       # amortize per-grid-step overhead for very large batches


def _choose_tn(n_pad: int) -> int:
    # n_pad is always a multiple of 128; prefer 256-aligned tiles (v6e/v7x MXU).
    return 256 if n_pad % 256 == 0 else 128


def _vmem_limit_bytes(tile_bytes: int) -> int:
    # ~2x for double-buffering plus headroom, capped for v7x.
    return int(min(_VMEM_CAP, max(4 * 1024 * 1024, 4 * tile_bytes)))


def _activation(out, act: str):
    if act == "sigmoid":
        return jax.nn.sigmoid(out)
    return jnp.maximum(out, 0.0)


# ---------------------------------------------------------------------------
# Kernels
# ---------------------------------------------------------------------------
def _fused_head_kernel(f1_ref, f2_ref, f3_ref, w1_ref, w2_ref, w3_ref, b_ref,
                       o_ref, *, act: str):
    """act(concat(f1,f2,f3) @ W + b) with the concat fused as three MXU dots."""
    acc = jnp.dot(f1_ref[...], w1_ref[...], preferred_element_type=jnp.float32)
    acc = acc + jnp.dot(f2_ref[...], w2_ref[...], preferred_element_type=jnp.float32)
    acc = acc + jnp.dot(f3_ref[...], w3_ref[...], preferred_element_type=jnp.float32)
    out = _activation(acc + b_ref[...], act)      # (1, TN) bias broadcasts
    o_ref[...] = out.astype(o_ref.dtype)


def _dense_kernel_single(x_ref, w_ref, b_ref, o_ref, *, act: str):
    """Whole K in one block: no accumulator scratch, single store per tile."""
    out = jnp.dot(x_ref[...], w_ref[...], preferred_element_type=jnp.float32)
    out = _activation(out + b_ref[...], act)
    o_ref[...] = out.astype(o_ref.dtype)


def _dense_kernel_acc(x_ref, w_ref, b_ref, o_ref, acc_ref, *, act: str):
    """K-tiled path: assign on k == 0 (no zero-init RMW), epilogue on last k."""
    k = pl.program_id(2)

    @pl.when(k == 0)
    def _first():
        acc_ref[...] = jnp.dot(x_ref[...], w_ref[...],
                               preferred_element_type=jnp.float32)

    @pl.when(k > 0)
    def _rest():
        acc_ref[...] += jnp.dot(x_ref[...], w_ref[...],
                                preferred_element_type=jnp.float32)

    @pl.when(k == pl.num_programs(2) - 1)
    def _epilogue():
        out = _activation(acc_ref[...] + b_ref[...], act)
        o_ref[...] = out.astype(o_ref.dtype)


# ---------------------------------------------------------------------------
# Parameter init (matches Dense.__init__: kaiming_normal_ fan_in/relu, zero bias)
# ---------------------------------------------------------------------------
def init_dense_gcn_head_params(key, sizes=(64, 32, 16), out_size=16,
                               compute_dtype=jnp.bfloat16):
    """fc = Dense(sum(sizes), out_size).  Weight stored pre-transposed (K, N_pad),
    pre-split along K to match the three concat inputs, N-padded, bf16 pre-cast."""
    in_size = sum(sizes)
    n_pad = _round_up(out_size, 128)
    std = jnp.sqrt(2.0 / in_size)
    w = jax.random.normal(key, (out_size, in_size), dtype=jnp.float32) * std
    w_kn = jnp.pad(w.T, ((0, 0), (0, n_pad - out_size)))     # (in_size, n_pad)
    parts, off = [], 0
    for s in sizes:
        parts.append(w_kn[off:off + s].astype(compute_dtype))
        off += s
    return {
        "w1": parts[0], "w2": parts[1], "w3": parts[2],
        "b": jnp.zeros((1, n_pad), dtype=jnp.float32),
        "sizes": tuple(sizes), "out_size": out_size,
    }


def init_dense_params(key, in_size, out_size, compute_dtype=jnp.bfloat16):
    """Generic Dense layer.  K is kept unpadded when it fits a single block;
    otherwise padded (zeros) to a 256-aligned K for MXU-friendly K tiles."""
    n_pad = _round_up(out_size, 128)
    k_pad = in_size if in_size <= _SINGLE_K_MAX else _round_up(in_size, 256)
    std = jnp.sqrt(2.0 / in_size)
    w = jax.random.normal(key, (out_size, in_size), dtype=jnp.float32) * std
    w_kn = jnp.pad(w.T, ((0, k_pad - in_size), (0, n_pad - out_size)))
    return {
        "w": w_kn.astype(compute_dtype),                      # (k_pad, n_pad)
        "b": jnp.zeros((1, n_pad), dtype=jnp.float32),
        "in_size": in_size, "out_size": out_size,
    }


# ---------------------------------------------------------------------------
# Forward wrappers
# ---------------------------------------------------------------------------
def dense_gcn_head_forward(f1, f2, f3, params, act: str = "relu"):
    """Fused equivalent of `self.fc(torch.cat((f1, f2, f3), 1))` (inference)."""
    s1, s2, s3 = params["sizes"]
    assert f1.shape[1] == s1 and f2.shape[1] == s2 and f3.shape[1] == s3
    B = f1.shape[0]
    w1, w2, w3, b = params["w1"], params["w2"], params["w3"], params["b"]
    n_pad = w1.shape[1]
    out_size = params["out_size"]
    cdt = w1.dtype
    itemsize = jnp.dtype(cdt).itemsize
    # Ideally the producing layers already emit compute_dtype; cast only if needed.
    f1, f2, f3 = (f.astype(cdt) for f in (f1, f2, f3))

    TM = _choose_tm(B, cdt)
    M_pad = _round_up(B, TM)
    if M_pad != B:
        rpad = ((0, M_pad - B), (0, 0))
        f1, f2, f3 = (jnp.pad(f, rpad) for f in (f1, f2, f3))
    TN = _choose_tn(n_pad)
    gm, gn = M_pad // TM, n_pad // TN
    k_tot = s1 + s2 + s3

    tile_bytes = (TM * k_tot * itemsize + k_tot * TN * itemsize
                  + TN * 4 + TM * TN * 4)
    cost = pl.CostEstimate(
        flops=2 * M_pad * k_tot * n_pad,
        transcendentals=(M_pad * n_pad if act == "sigmoid" else 0),
        bytes_accessed=int(gn * M_pad * k_tot * itemsize      # activations / N tile
                           + gm * k_tot * n_pad * itemsize    # weights / M tile
                           + gm * gn * n_pad * 4              # bias
                           + M_pad * n_pad * 4),              # output
    )

    out = pl.pallas_call(
        functools.partial(_fused_head_kernel, act=act),
        out_shape=jax.ShapeDtypeStruct((M_pad, n_pad), jnp.float32),
        grid=(gm, gn),
        in_specs=[
            pl.BlockSpec((TM, s1), lambda i, j: (i, 0)),   # f1 (full-K block)
            pl.BlockSpec((TM, s2), lambda i, j: (i, 0)),   # f2
            pl.BlockSpec((TM, s3), lambda i, j: (i, 0)),   # f3
            pl.BlockSpec((s1, TN), lambda i, j: (0, j)),   # W[:64]
            pl.BlockSpec((s2, TN), lambda i, j: (0, j)),   # W[64:96]
            pl.BlockSpec((s3, TN), lambda i, j: (0, j)),   # W[96:112]
            pl.BlockSpec((1, TN), lambda i, j: (0, j)),    # bias
        ],
        out_specs=pl.BlockSpec((TM, TN), lambda i, j: (i, j)),
        compiler_params=pltpu.CompilerParams(
            dimension_semantics=("parallel", "parallel"),
            vmem_limit_bytes=_vmem_limit_bytes(tile_bytes),
        ),
        cost_estimate=cost,
    )(f1, f2, f3, w1, w2, w3, b)
    return out[:B, :out_size]


def dense_forward(x, params, act: str = "relu"):
    """Generic act(x @ W + b) (the standalone `Dense` module)."""
    B, K = x.shape
    assert K == params["in_size"], "feature dim mismatch"
    w, b = params["w"], params["b"]               # (K_pad, N_pad), (1, N_pad)
    K_pad, N_pad = w.shape
    out_size = params["out_size"]
    cdt = w.dtype
    itemsize = jnp.dtype(cdt).itemsize
    x = x.astype(cdt)

    TM = _choose_tm(B, cdt)
    M_pad = _round_up(B, TM)
    if M_pad != B or K_pad != K:
        x = jnp.pad(x, ((0, M_pad - B), (0, K_pad - K)))
    TN = _choose_tn(N_pad)
    single_k = K_pad <= _SINGLE_K_MAX
    TK = K_pad if single_k else (512 if K_pad % 512 == 0 else 256)
    gm, gn, gk = M_pad // TM, N_pad // TN, K_pad // TK

    tile_bytes = (TM * TK * itemsize + TK * TN * itemsize + TN * 4
                  + TM * TN * 4 + (0 if single_k else TM * TN * 4))
    cost = pl.CostEstimate(
        flops=2 * M_pad * K_pad * N_pad,
        transcendentals=(M_pad * N_pad if act == "sigmoid" else 0),
        bytes_accessed=int(gn * M_pad * K_pad * itemsize
                           + gm * K_pad * N_pad * itemsize
                           + gm * gn * N_pad * 4
                           + M_pad * N_pad * 4),
    )
    cparams_kwargs = dict(vmem_limit_bytes=_vmem_limit_bytes(tile_bytes))

    if single_k:
        out = pl.pallas_call(
            functools.partial(_dense_kernel_single, act=act),
            out_shape=jax.ShapeDtypeStruct((M_pad, N_pad), jnp.float32),
            grid=(gm, gn),
            in_specs=[
                pl.BlockSpec((TM, K_pad), lambda i, j: (i, 0)),
                pl.BlockSpec((K_pad, TN), lambda i, j: (0, j)),
                pl.BlockSpec((1, TN), lambda i, j: (0, j)),
            ],
            out_specs=pl.BlockSpec((TM, TN), lambda i, j: (i, j)),
            compiler_params=pltpu.CompilerParams(
                dimension_semantics=("parallel", "parallel"), **cparams_kwargs),
            cost_estimate=cost,
        )(x, w, b)
    else:
        out = pl.pallas_call(
            functools.partial(_dense_kernel_acc, act=act),
            out_shape=jax.ShapeDtypeStruct((M_pad, N_pad), jnp.float32),
            grid=(gm, gn, gk),
            in_specs=[
                pl.BlockSpec((TM, TK), lambda i, j, k: (i, k)),
                pl.BlockSpec((TK, TN), lambda i, j, k: (k, j)),
                pl.BlockSpec((1, TN), lambda i, j, k: (0, j)),
            ],
            out_specs=pl.BlockSpec((TM, TN), lambda i, j, k: (i, j)),
            scratch_shapes=[pltpu.VMEM((TM, TN), jnp.float32)],
            compiler_params=pltpu.CompilerParams(
                dimension_semantics=("parallel", "parallel", "arbitrary"),
                **cparams_kwargs),
            cost_estimate=cost,
        )(x, w, b)
    return out[:B, :out_size]


# ---------------------------------------------------------------------------
if __name__ == "__main__":
    key = jax.random.PRNGKey(0)
    k1, k2, k3, kw, kw2, kx2 = jax.random.split(key, 6)

    # --- Dense_GCN head: fc(cat(f1, f2, f3)), 64 + 32 + 16 -> 16, ReLU ----------
    n_nodes = 256
    f1 = jax.nn.relu(jax.random.normal(k1, (n_nodes, 64), jnp.float32))
    f2 = jax.nn.relu(jax.random.normal(k2, (n_nodes, 32), jnp.float32))
    f3 = jax.nn.relu(jax.random.normal(k3, (n_nodes, 16), jnp.float32))
    # In the full model the GCN layers would emit bf16 activations directly.
    f1b, f2b, f3b = (f.astype(jnp.bfloat16) for f in (f1, f2, f3))

    head = init_dense_gcn_head_params(kw, (64, 32, 16), 16)
    out = jax.block_until_ready(dense_gcn_head_forward(f1b, f2b, f3b, head))

    # Reference in f32 on the same bf16-rounded operands (kernel accumulates f32).
    cat = jnp.concatenate([f1b, f2b, f3b], axis=1).astype(jnp.float32)
    w_full = jnp.concatenate(
        [head["w1"], head["w2"], head["w3"]], axis=0).astype(jnp.float32)
    ref = jnp.maximum(cat @ w_full[:, :16] + head["b"][0, :16], 0.0)
    assert out.shape == (n_nodes, 16)
    assert jnp.allclose(out, ref, atol=2e-3, rtol=2e-3)

    # --- Awkward node count: exercises M padding to a multiple of TM ------------
    nb = 60
    out_small = jax.block_until_ready(
        dense_gcn_head_forward(f1b[:nb], f2b[:nb], f3b[:nb], head))
    assert out_small.shape == (nb, 16)
    assert jnp.allclose(out_small, ref[:nb], atol=2e-3, rtol=2e-3)

    # --- Standalone Dense with a large K: exercises the K-tiled accumulator path
    B2, K2, N2 = 256, 1024, 256
    params2 = init_dense_params(kw2, K2, N2)
    x2 = jax.random.normal(kx2, (B2, K2), jnp.float32)
    out2 = jax.block_until_ready(dense_forward(x2, params2, act="sigmoid"))
    x2r = x2.astype(jnp.bfloat16).astype(jnp.float32)
    ref2 = jax.nn.sigmoid(
        x2r @ params2["w"][:K2, :N2].astype(jnp.float32) + params2["b"][0, :N2])
    assert out2.shape == (B2, N2)
    assert jnp.allclose(out2, ref2, atol=2e-3, rtol=2e-3)

    print("KERNEL_OK")
</pallas_src>

<mosaic_0001>
module attributes {stable_mosaic.version = 11 : i64} {
  func.func @_fused_head_kernel(%arg0: i32, %arg1: i32, %arg2: memref<128x64xbf16, #tpu.memory_space<vmem>>, %arg3: memref<128x32xbf16, #tpu.memory_space<vmem>>, %arg4: memref<128x16xbf16, #tpu.memory_space<vmem>>, %arg5: memref<64x128xbf16, #tpu.memory_space<vmem>>, %arg6: memref<32x128xbf16, #tpu.memory_space<vmem>>, %arg7: memref<16x128xbf16, #tpu.memory_space<vmem>>, %arg8: memref<1x128xf32, #tpu.memory_space<vmem>>, %arg9: memref<128x128xf32, #tpu.memory_space<vmem>>) attributes {dimension_semantics = [#tpu.dimension_semantics<parallel>, #tpu.dimension_semantics<parallel>], iteration_bounds = array<i64: 2, 1>, scalar_prefetch = 0 : i64, scratch_operands = 0 : i64, tpu.core_type = #tpu.core_type<tc>, window_params = [{transform_indices = @transform_0, window_bounds = array<i64: 128, 64>}, {transform_indices = @transform_1, window_bounds = array<i64: 128, 32>}, {transform_indices = @transform_2, window_bounds = array<i64: 128, 16>}, {transform_indices = @transform_3, window_bounds = array<i64: 64, 128>}, {transform_indices = @transform_4, window_bounds = array<i64: 32, 128>}, {transform_indices = @transform_5, window_bounds = array<i64: 16, 128>}, {transform_indices = @transform_6, window_bounds = array<i64: 1, 128>}, {transform_indices = @transform_7, window_bounds = array<i64: 128, 128>}]} {
    %c0 = arith.constant 0 : index
    %c0_0 = arith.constant 0 : index
    %0 = vector.load %arg2[%c0, %c0_0] : memref<128x64xbf16, #tpu.memory_space<vmem>>, vector<128x64xbf16>
    %c0_1 = arith.constant 0 : index
    %c0_2 = arith.constant 0 : index
    %1 = vector.load %arg5[%c0_1, %c0_2] : memref<64x128xbf16, #tpu.memory_space<vmem>>, vector<64x128xbf16>
    %cst = arith.constant dense<0.000000e+00> : vector<128x128xf32>
    %2 = tpu.matmul %0, %1, %cst {dimension_numbers = #tpu.dot_dimension_numbers<[1], [0], [0], [1], [0, 0, 1, 1], [], []>} : vector<128x64xbf16>, vector<64x128xbf16>, vector<128x128xf32> -> vector<128x128xf32>
    %c0_3 = arith.constant 0 : index
    %c0_4 = arith.constant 0 : index
    %3 = vector.load %arg3[%c0_3, %c0_4] : memref<128x32xbf16, #tpu.memory_space<vmem>>, vector<128x32xbf16>
    %c0_5 = arith.constant 0 : index
    %c0_6 = arith.constant 0 : index
    %4 = vector.load %arg6[%c0_5, %c0_6] : memref<32x128xbf16, #tpu.memory_space<vmem>>, vector<32x128xbf16>
    %cst_7 = arith.constant dense<0.000000e+00> : vector<128x128xf32>
    %5 = tpu.matmul %3, %4, %cst_7 {dimension_numbers = #tpu.dot_dimension_numbers<[1], [0], [0], [1], [0, 0, 1, 1], [], []>} : vector<128x32xbf16>, vector<32x128xbf16>, vector<128x128xf32> -> vector<128x128xf32>
    %6 = arith.addf %2, %5 : vector<128x128xf32>
    %c0_8 = arith.constant 0 : index
    %c0_9 = arith.constant 0 : index
    %7 = vector.load %arg4[%c0_8, %c0_9] : memref<128x16xbf16, #tpu.memory_space<vmem>>, vector<128x16xbf16>
    %c0_10 = arith.constant 0 : index
    %c0_11 = arith.constant 0 : index
    %8 = vector.load %arg7[%c0_10, %c0_11] : memref<16x128xbf16, #tpu.memory_space<vmem>>, vector<16x128xbf16>
    %cst_12 = arith.constant dense<0.000000e+00> : vector<128x128xf32>
    %9 = tpu.matmul %7, %8, %cst_12 {dimension_numbers = #tpu.dot_dimension_numbers<[1], [0], [0], [1], [0, 0, 1, 1], [], []>} : vector<128x16xbf16>, vector<16x128xbf16>, vector<128x128xf32> -> vector<128x128xf32>
    %10 = arith.addf %6, %9 : vector<128x128xf32>
    %c0_13 = arith.constant 0 : index
    %c0_14 = arith.constant 0 : index
    %11 = vector.load %arg8[%c0_13, %c0_14] : memref<1x128xf32, #tpu.memory_space<vmem>>, vector<1x128xf32>
    %12 = vector.broadcast %11 : vector<1x128xf32> to vector<128x128xf32>
    %13 = arith.addf %10, %12 : vector<128x128xf32>
    %cst_15 = arith.constant 0.000000e+00 : f32
    %14 = vector.broadcast %cst_15 : f32 to vector<128x128xf32>
    %15 = arith.maximumf %13, %14 : vector<128x128xf32>
    %c0_16 = arith.constant 0 : index
    %c0_17 = arith.constant 0 : index
    %16 = vector.load %arg9[%c0_16, %c0_17] : memref<128x128xf32, #tpu.memory_space<vmem>>, vector<128x128xf32>
    tpu.vector_store %arg9[%c0_16, %c0_17], %15 {strides = array<i32>} : memref<128x128xf32, #tpu.memory_space<vmem>>, vector<128x128xf32>,
    return
  }
  func.func @transform_0(%arg0: i32, %arg1: i32) -> (i32, i32) {
    %c0_i32 = arith.constant 0 : i32
    %c0_i32_0 = arith.constant 0 : i32
    return %arg0, %c0_i32 : i32, i32
  }
  func.func @transform_1(%arg0: i32, %arg1: i32) -> (i32, i32) {
    %c0_i32 = arith.constant 0 : i32
    %c0_i32_0 = arith.constant 0 : i32
    return %arg0, %c0_i32 : i32, i32
  }
  func.func @transform_2(%arg0: i32, %arg1: i32) -> (i32, i32) {
    %c0_i32 = arith.constant 0 : i32
    %c0_i32_0 = arith.constant 0 : i32
    return %arg0, %c0_i32 : i32, i32
  }
  func.func @transform_3(%arg0: i32, %arg1: i32) -> (i32, i32) {
    %c0_i32 = arith.constant 0 : i32
    %c0_i32_0 = arith.constant 0 : i32
    return %c0_i32, %arg1 : i32, i32
  }
  func.func @transform_4(%arg0: i32, %arg1: i32) -> (i32, i32) {
    %c0_i32 = arith.constant 0 : i32
    %c0_i32_0 = arith.constant 0 : i32
    return %c0_i32, %arg1 : i32, i32
  }
  func.func @transform_5(%arg0: i32, %arg1: i32) -> (i32, i32) {
    %c0_i32 = arith.constant 0 : i32
    %c0_i32_0 = arith.constant 0 : i32
    return %c0_i32, %arg1 : i32, i32
  }
  func.func @transform_6(%arg0: i32, %arg1: i32) -> (i32, i32) {
    %c0_i32 = arith.constant 0 : i32
    %c0_i32_0 = arith.constant 0 : i32
    return %c0_i32, %arg1 : i32, i32
  }
  func.func @transform_7(%arg0: i32, %arg1: i32) -> (i32, i32) {
    %c0_i32 = arith.constant 0 : i32
    return %arg0, %arg1 : i32, i32
  }
}

</mosaic_0001>

<bundles_post_ra>
// kernel: tpu_custom_call.1
= control target key start
LH: loop header
LB: loop body
LE: loop exit
PB: predicated region body
PF: predicated region fallthrough
CT: control target
= control target key end

     0   :  { %12 = vsyncpa [#allocation3], 0  ;;  %s1703_s0 = inlined_call_operand.vmem [shape: bf16[256,64], index: 0, kind: input, shape index: {}]   ;;  %s1704_s1 = inlined_call_operand.vmem [shape: bf16[256,32], index: 1, kind: input, shape index: {}]   ;;  %s1705_s2 = inlined_call_operand.vmem [shape: bf16[256,16], index: 2, kind: input, shape index: {}]   ;;  %s1706_s3 = inlined_call_operand.vmem [shape: bf16[64,128], index: 3, kind: input, shape index: {}]   ;;  %s1707_s4 = inlined_call_operand.vmem [shape: bf16[32,128], index: 4, kind: input, shape index: {}]   ;;  %s1708_s5 = inlined_call_operand.vmem [shape: bf16[16,128], index: 5, kind: input, shape index: {}]   ;;  %s1709_s6 = inlined_call_operand.vmem [shape: f32[1,128], index: 6, kind: input, shape index: {}]   ;;  %s1710_s7 = inlined_call_operand.hbm [shape: f32[256,128], index: 7, kind: output, shape index: {}]  }
   0x1   :  { %14 = vsyncpa [#allocation3 + $0x1], 0  ;;  %s1476_s24 = smov 0   ;;  %s1478_s25 = smov 0  }
   0x2   :  { %s1480_s26 = smov 0   ;;  %s1482_s27 = smov 0  }
   0x3   :  { %s1484_s28 = smov 0   ;;  %s1486_s29 = smov 0  }
   0x4 LB: > { %s1088_s30 = sadd.s32 4294967295, %s1432_s29   ;;  %s1089_s8 = sadd.s32 4294967294, %s1432_s29   ;;  %s1432_s29 = sphi %s1486_s29, %s20_s29   ;;  %s1428_s28 = sphi %s1484_s28, %s1717_s28   ;;  %s1424_s27 = sphi %s1482_s27, %s1716_s27   ;;  %s1420_s26 = sphi %s1480_s26, %s1715_s26   ;;  %s1416_s25 = sphi %s1478_s25, %s1714_s25   ;;  %s1412_s24 = sphi %s1476_s24, %s1713_s24  }
   0x5   : > { %s32_s9 = sadd.s32 1, %s1428_s28  ;;  %s223_s10 = sadd.s32 1, %s1420_s26 }
   0x6   : > { %p34_p0 = scmp.ge.s32.totalorder %s32_s9, 2  ;;  %p233_p1 = scmp.ne.s32.totalorder %s1420_s26, %s1416_s25 }
   0x7   : > { %p234_p2 = scmp.eq.s32.totalorder %s1088_s30, 1  ;;  %p239_p3 = scmp.ne.s32.totalorder %s1416_s25, %s1412_s24 }
   0x8   : > { %s1719_s9 = smov (%p34_p0, %s32_s9), 0  ;;  %p240_p5 = scmp.eq.s32.totalorder %s1089_s8, 1 }
   0x9   : > { %p1516_p4 = por %p234_p2, %p233_p1  ;;  %s218_s12 = ssub.s32 %s1428_s28, %s1719_s9 }
   0xa   : > { %p1096_p6 = scmp.ge.s32.totalorder %s1432_s29, 1  ;;  %p221_p7 = scmp.eq.s32.totalorder %s218_s12, 0 }
   0xb   : > { %p1523_p8 = por %p240_p5, %p239_p3  ;;  %p312_p9 = scmp.lt.s32.totalorder %s1432_s29, 3 }
   0xc   : > { %s1529_s14 = scalar_select %p221_p7, %s1420_s26, %s223_s10  }
   0xd   : > { %p313_p10 = pnand %p1096_p6, %p312_p9 }
   0xe   : > { %s1098_s19 = sshll.u32 (!%p313_p10), %s1424_s27, 4 }
   0xf   : > { %316 = sbr.rel (%p313_p10) target bundleno = 272 (0x110), region = 48  ;;  %p370_p11 = scmp.lt.s32.totalorder (!%p313_p10), %s1098_s19, 31 }
  0x14   : > { %v1278_v0 = vld [vmem:[%s1707_s4 + $0x8] sm:$0xff]  ;;  %v1268_v1 = vld [vmem:[%s1706_s3 + $0x18] sm:$0xff]  ;;  %v1287_v2 = vld [vmem:[%s1708_s5] sm:$0xff]  ;;  %s1721_s19 = smov (!%p370_p11, %s1098_s19), 31  ;;  %vm500_vm0 = vcmask 261120   ;;  %vm776_vm1 = vcmask 130048  }
  0x15   : > { %531 = vmatpush.bf16.msra.mxu0 %v1278_v0  ;;  %1289 = vmatpush.bf16.msra.mxu3 %v1278_v0  ;;  %v1277_v3 = vld [vmem:[%s1707_s4] sm:$0xff]  ;;  %v1267_v4 = vld [vmem:[%s1706_s3 + $0x10] sm:$0xff]  ;;  %s1099_s10 = sshll.u32 %s1721_s19, 2  ;;  %v1266_v5 = vld [vmem:[%s1706_s3 + $0x8] sm:$0xff]  ;;  %vm638_vm2 = vcmask 523264  }
  0x16   : > { %667 = vmatpush.bf16.msra.mxu1 %v1268_v1  ;;  %808 = vmatpush.bf16.msra.mxu2 %v1287_v2  ;;  %s1550_s16 = scalar_lea.vmem %s1704_s1, %s1099_s10  ;;  %s1555_s20 = scalar_lea.vmem %s1705_s2, %s1099_s10  ;;  %v1265_v9 = vld [vmem:[%s1706_s3] sm:$0xff] }
  0x17   : > { %v1269_v6 = vld [vmem:[%s1550_s16] sm:$0xff]  ;;  %v1276_v7 = vld [vmem:[%s1550_s16 + $0x38] sm:$0xff]  ;;  %s1572_s12 = scalar_lea.vmem %s1703_s0, %s1099_s10  ;;  %v1270_v11 = vld [vmem:[%s1550_s16 + $0x8] sm:$0xff]  ;;  %s366_s10 = sand.u32 1, %s1416_s25  }
  0x18   : > { %v1279_v8 = vld [vmem:[%s1555_s20] sm:$0xff]  ;;  %v1263_v12 = vld [vmem:[%s1572_s12 + $0x30] sm:$0xff]  ;;  %v1280_v13 = vld [vmem:[%s1555_s20 + $0x8] sm:$0xff]  ;;  %s1097_s18 = sshll.u32 %s366_s10, 7 }
  0x19   : > { %532 = vmatpush.bf16.msra.mxu0 %v1277_v3  ;;  %1290 = vmatpush.bf16.msra.mxu3 %v1277_v3  ;;  %v1257_v10 = vld [vmem:[%s1572_s12] sm:$0xff]  ;;  %v1258_v14 = vld [vmem:[%s1572_s12 + $0x8] sm:$0xff]  ;;  %v1271_v15 = vld [vmem:[%s1550_s16 + $0x10] sm:$0xff] }
  0x1a   : > { %668 = vmatpush.bf16.msra.mxu1 %v1267_v4  ;;  %1244 = vmatmul.msk.bf16.vlgmr.msra.gmra.mxu2 %vm776_vm1, %v1279_v8  ;;  %v1264_v16 = vld [vmem:[%s1572_s12 + $0x38] sm:$0xff]  ;;  %v1281_v17 = vld [vmem:[%s1555_s20 + $0x10] sm:$0xff]  ;;  %v1273_v23 = vld [vmem:[%s1550_s16 + $0x20] sm:$0xff] }
  0x1b   : > { %v1259_v18 = vld [vmem:[%s1572_s12 + $0x10] sm:$0xff]  ;;  %v1272_v19 = vld [vmem:[%s1550_s16 + $0x18] sm:$0xff]  ;;  %v1283_v24 = vld [vmem:[%s1555_s20 + $0x20] sm:$0xff] }
  0x1c   : > { %1144 = vmatmul.msk.bf16.vlgmr.msra.gmra.mxu0 %vm500_vm0, %v1269_v6  ;;  %1151 = vmatmul.msk.bf16.vlgmr.msra.gmra.mxu3 %vm500_vm0, %v1276_v7  ;;  %v1286_v20 = vld [vmem:[%s1555_s20 + $0x38] sm:$0xff]  ;;  %v1261_v25 = vld [vmem:[%s1572_s12 + $0x20] sm:$0xff]  ;;  %v1274_v26 = vld [vmem:[%s1550_s16 + $0x28] sm:$0xff] }
  0x1d   : > { %1291 = vmatpush.bf16.msrb.mxu3 %v1268_v1  ;;  %v1282_v21 = vld [vmem:[%s1555_s20 + $0x18] sm:$0xff]  ;;  %v1284_v27 = vld [vmem:[%s1555_s20 + $0x28] sm:$0xff]  ;;  %v1275_v29 = vld [vmem:[%s1550_s16 + $0x30] sm:$0xff]  ;;  %s1625_s16 = scalar_lea.vmem [#allocation2], %s1097_s18  ;;  %s1374_s18 = scalar_lea.hbm %s1710_s7, 256 }
  0x1e   : > { %669 = vmatpush.bf16.msra.mxu1 %v1266_v5  ;;  %v1260_v22 = vld [vmem:[%s1572_s12 + $0x18] sm:$0xff]  ;;  %v1262_v28 = vld [vmem:[%s1572_s12 + $0x28] sm:$0xff]  ;;  %v1285_v30 = vld [vmem:[%s1555_s20 + $0x30] sm:$0xff]  ;;  %s1288_s20 = sshll.u32 %s1424_s27, 7  ;;  %s932_s23 = sshll.u32 %s1625_s16, 4  ;;  %s933_s23 = int_to_ptr.vmem [resolvable:$true] %s932_s23 }
  0x1f   : > { %v1620_v37 = vld [vmem:[%s1709_s6] ss:$0 sm:$0xff]  ;;  %s931_s19 = scalar_lea.hbm %s1710_s7, %s1288_s20  ;;  %s919_s27 = scalar_lea.sflag [#allocation3], %s366_s10 }
  0x20   : > { %s934_s30 = sshll.u32 %s931_s19, 4  ;;  %s935_s30 = int_to_ptr.hbm [resolvable:$true] %s934_s30 }
  0x21   : > { %1292 = vmatpush.bf16.msrb.mxu3 %v1267_v4  ;;  %s1368_s8 = sshra.s32 %s935_s30, 4  ;;  %s1369_s8 = int_to_ptr.hbm [resolvable:$true] %s1368_s8 }
  0x22   : > { %670 = vmatpush.bf16.msra.mxu1 %v1265_v9  ;;  %s1370_s12 = scalar_lea.hbm %s1369_s8, 128  ;;  %p1375_p1 = scmp.lt.s32.totalorder %s1369_s8, %s1710_s7 }
  0x23   : > { %p1371_p12 = scmp.ne.s32.totalorder %s1369_s8, %s1370_s12  ;;  %p1376_p2 = scmp.lt.s32.totalorder %s1374_s18, %s1370_s12 }
  0x25   : > { %1293 = vmatpush.bf16.msrb.mxu3 %v1266_v5  ;;  %1200 = vmatmul.msk.bf16.vlgmr.msra.gmra.mxu1 %vm638_vm2, %v1257_v10  ;;  %p1372_p13 = pnand %p1371_p12, %p1516_p4  ;;  %p1377_p3 = por %p1376_p2, %p1375_p1 }
  0x27   : > { %p1373_p0 = pneg %p1372_p13 }
  0x29   : > { %1294 = vmatpush.bf16.msrb.mxu3 %v1265_v9  ;;  %p1378_p5 = pnand %p1377_p3, %p1373_p0 }
  0x2a   : > { %1245 = vmatmul.msk.bf16.gmra.mxu2 %vm776_vm1, %v1280_v13 }
  0x2c   : > { %1145 = vmatmul.msk.bf16.gmra.mxu0 %vm500_vm0, %v1270_v11  ;;  %1206 = vmatmul.msk.bf16.vlgmr.msrb.gmra.mxu3 %vm638_vm2, %v1263_v12 }
  0x2d   : > { %1295 = vmatpush.bf16.msra.mxu3 %v1287_v2 }
  0x35   : > { %1201 = vmatmul.msk.bf16.gmra.mxu1 %vm638_vm2, %v1258_v14 }
  0x3a   : > { %1246 = vmatmul.msk.bf16.gmra.mxu2 %vm776_vm1, %v1281_v17 }
  0x3c   : > { %1146 = vmatmul.msk.bf16.gmra.mxu0 %vm500_vm0, %v1271_v15  ;;  %1207 = vmatmul.msk.bf16.gmra.mxu3 %vm638_vm2, %v1264_v16 }
  0x45   : > { %1202 = vmatmul.msk.bf16.gmra.mxu1 %vm638_vm2, %v1259_v18 }
  0x4a   : > { %1247 = vmatmul.msk.bf16.gmra.mxu2 %vm776_vm1, %v1282_v21 }
  0x4c   : > { %1147 = vmatmul.msk.bf16.gmra.mxu0 %vm500_vm0, %v1272_v19  ;;  %1251 = vmatmul.msk.bf16.vlgmr.msra.gmra.mxu3 %vm776_vm1, %v1286_v20 }
  0x55   : > { %1203 = vmatmul.msk.bf16.gmra.mxu1 %vm638_vm2, %v1260_v22 }
  0x5a   : > { %1248 = vmatmul.msk.bf16.gmra.mxu2 %vm776_vm1, %v1283_v24 }
  0x5c   : > { %1148 = vmatmul.msk.bf16.gmra.mxu0 %vm500_vm0, %v1273_v23 }
  0x65   : > { %1204 = vmatmul.msk.bf16.gmra.mxu1 %vm638_vm2, %v1261_v25 }
  0x6a   : > { %1249 = vmatmul.msk.bf16.gmra.mxu2 %vm776_vm1, %v1284_v27 }
  0x6c   : > { %1149 = vmatmul.msk.bf16.gmra.mxu0 %vm500_vm0, %v1274_v26 }
  0x75   : > { %1205 = vmatmul.msk.bf16.gmra.mxu1 %vm638_vm2, %v1262_v28 }
  0x7a   : > { %1250 = vmatmul.msk.bf16.gmra.mxu2 %vm776_vm1, %v1285_v30 }
  0x7c   : > { %1150 = vmatmul.msk.bf16.gmra.mxu0 %vm500_vm0, %v1275_v29 }
  0x99   : > { %v534_v31 = vpop.f32.mrf.mxu0 }
  0x9d   : > { %v810_v33 = vpop.f32.mrf.mxu2 }
  0x9f   : > { %v569_v32 = vpop.f32.mrf.mxu3 }
  0xa1   : > { %v536_v34 = vpop.f32.mrf.mxu0 }
  0xa2   : > { %v672_v35 = vpop.f32.mrf.mxu1 }
  0xa3   : > { %v673_v36 = vadd.f32 %v672_v35, %v534_v31 }
  0xa5   : > { %v850_v38 = vadd.f32 %v810_v33, %v673_v36  ;;  %v812_v41 = vpop.f32.mrf.mxu2 }
  0xa7   : > { %v870_v39 = vadd.f32 %v1620_v37, %v850_v38  ;;  %v571_v40 = vpop.f32.mrf.mxu3 }
  0xa9   : > { %v886_v42 = vmax.f32 %v870_v39, 0.0  ;;  %v539_v43 = vpop.f32.mrf.mxu0 }
  0xaa   : > { %v674_v44 = vpop.f32.mrf.mxu1 }
  0xab   : > { %902 = vst [vmem:[%s1625_s16] sm:$0xff] %v886_v42  ;;  %v675_v45 = vadd.f32 %v674_v44, %v536_v34 }
  0xad   : > { %v851_v46 = vadd.f32 %v812_v41, %v675_v45  ;;  %v815_v49 = vpop.f32.mrf.mxu2 }
  0xaf   : > { %v871_v47 = vadd.f32 %v1620_v37, %v851_v46  ;;  %v1629_v48 = vpop.f32.mrf.mxu3 }
  0xb1   : > { %v887_v50 = vmax.f32 %v871_v47, 0.0  ;;  %v541_v51 = vpop.f32.mrf.mxu0 }
  0xb2   : > { %v677_v52 = vpop.f32.mrf.mxu1 }
  0xb3   : > { %903 = vst [vmem:[%s1625_s16 + $0x8] sm:$0xff] %v887_v50  ;;  %v678_v53 = vadd.f32 %v677_v52, %v539_v43 }
  0xb5   : > { %v852_v54 = vadd.f32 %v815_v49, %v678_v53  ;;  %v817_v57 = vpop.f32.mrf.mxu2 }
  0xb7   : > { %v872_v55 = vadd.f32 %v1620_v37, %v852_v54  ;;  %v1633_v56 = vpop.f32.mrf.mxu3 }
  0xb9   : > { %v888_v58 = vmax.f32 %v872_v55, 0.0  ;;  %v544_v59 = vpop.f32.mrf.mxu0 }
  0xba   : > { %v679_v60 = vpop.f32.mrf.mxu1 }
  0xbb   : > { %904 = vst [vmem:[%s1625_s16 + $0x10] sm:$0xff] %v888_v58  ;;  %v680_v61 = vadd.f32 %v679_v60, %v541_v51 }
  0xbd   : > { %v853_v62 = vadd.f32 %v817_v57, %v680_v61  ;;  %v820_v1 = vpop.f32.mrf.mxu2 }
  0xbf   : > { %v873_v63 = vadd.f32 %v1620_v37, %v853_v62  ;;  %v707_v0 = vpop.f32.mrf.mxu3 }
  0xc0   : > { %v708_v14 = vadd.f32 %v707_v0, %v569_v32 }
  0xc1   : > { %v889_v2 = vmax.f32 %v873_v63, 0.0  ;;  %v546_v3 = vpop.f32.mrf.mxu0 }
  0xc2   : > { %v682_v4 = vpop.f32.mrf.mxu1 }
  0xc3   : > { %905 = vst [vmem:[%s1625_s16 + $0x18] sm:$0xff] %v889_v2  ;;  %v683_v5 = vadd.f32 %v682_v4, %v544_v59 }
  0xc5   : > { %v854_v6 = vadd.f32 %v820_v1, %v683_v5  ;;  %v822_v9 = vpop.f32.mrf.mxu2 }
  0xc7   : > { %v874_v7 = vadd.f32 %v1620_v37, %v854_v6  ;;  %v709_v8 = vpop.f32.mrf.mxu3 }
  0xc8   : > { %v710_v27 = vadd.f32 %v709_v8, %v571_v40 }
  0xc9   : > { %v890_v10 = vmax.f32 %v874_v7, 0.0  ;;  %v549_v11 = vpop.f32.mrf.mxu0 }
  0xca   : > { %v684_v12 = vpop.f32.mrf.mxu1 }
  0xcb   : > { %906 = vst [vmem:[%s1625_s16 + $0x20] sm:$0xff] %v890_v10  ;;  %v685_v13 = vadd.f32 %v684_v12, %v546_v3 }
  0xcd   : > { %v855_v15 = vadd.f32 %v822_v9, %v685_v13  ;;  %v825_v18 = vpop.f32.mrf.mxu2 }
  0xcf   : > { %v875_v16 = vadd.f32 %v1620_v37, %v855_v15  ;;  %v845_v17 = vpop.f32.mrf.mxu3 }
  0xd0   : > { %v864_v19 = vadd.f32 %v845_v17, %v708_v14 }
  0xd1   : > { %v891_v20 = vmax.f32 %v875_v16, 0.0  ;;  %v551_v21 = vpop.f32.mrf.mxu0 }
  0xd2   : > { %v884_v22 = vadd.f32 %v1620_v37, %v864_v19  ;;  %v687_v23 = vpop.f32.mrf.mxu1 }
  0xd3   : > { %907 = vst [vmem:[%s1625_s16 + $0x28] sm:$0xff] %v891_v20  ;;  %v688_v24 = vadd.f32 %v687_v23, %v549_v11 }
  0xd4   : > { %v900_v25 = vmax.f32 %v884_v22, 0.0 }
  0xd5   : > { %v856_v26 = vadd.f32 %v825_v18, %v688_v24  ;;  %v827_v30 = vpop.f32.mrf.mxu2 }
  0xd6   : > { %916 = vst [vmem:[%s1625_s16 + $0x70] sm:$0xff] %v900_v25 }
  0xd7   : > { %v876_v28 = vadd.f32 %v1620_v37, %v856_v26  ;;  %v847_v29 = vpop.f32.mrf.mxu3 }
  0xd8   : > { %v865_v31 = vadd.f32 %v847_v29, %v710_v27 }
  0xd9   : > { %v892_v32 = vmax.f32 %v876_v28, 0.0  ;;  %v554_v33 = vpop.f32.mrf.mxu0 }
  0xda   : > { %v885_v34 = vadd.f32 %v1620_v37, %v865_v31  ;;  %v689_v35 = vpop.f32.mrf.mxu1 }
  0xdb   : > { %908 = vst [vmem:[%s1625_s16 + $0x30] sm:$0xff] %v892_v32  ;;  %v690_v36 = vadd.f32 %v689_v35, %v551_v21 }
  0xdc   : > { %v901_v38 = vmax.f32 %v885_v34, 0.0 }
  0xdd   : > { %v857_v39 = vadd.f32 %v827_v30, %v690_v36  ;;  %v830_v41 = vpop.f32.mrf.mxu2 }
  0xde   : > { %917 = vst [vmem:[%s1625_s16 + $0x78] sm:$0xff] %v901_v38 }
  0xdf   : > { %v877_v40 = vadd.f32 %v1620_v37, %v857_v39 }
  0xe1   : > { %v893_v42 = vmax.f32 %v877_v40, 0.0  ;;  %v556_v43 = vpop.f32.mrf.mxu0 }
  0xe2   : > { %v692_v44 = vpop.f32.mrf.mxu1 }
  0xe3   : > { %909 = vst [vmem:[%s1625_s16 + $0x38] sm:$0xff] %v893_v42  ;;  %v693_v45 = vadd.f32 %v692_v44, %v554_v33 }
  0xe5   : > { %v858_v46 = vadd.f32 %v830_v41, %v693_v45  ;;  %v832_v49 = vpop.f32.mrf.mxu2 }
  0xe7   : > { %v878_v47 = vadd.f32 %v1620_v37, %v858_v46 }
  0xe9   : > { %v894_v50 = vmax.f32 %v878_v47, 0.0  ;;  %v559_v51 = vpop.f32.mrf.mxu0 }
  0xea   : > { %v694_v52 = vpop.f32.mrf.mxu1 }
  0xeb   : > { %910 = vst [vmem:[%s1625_s16 + $0x40] sm:$0xff] %v894_v50  ;;  %v695_v53 = vadd.f32 %v694_v52, %v556_v43 }
  0xed   : > { %v859_v54 = vadd.f32 %v832_v49, %v695_v53  ;;  %v835_v57 = vpop.f32.mrf.mxu2 }
  0xef   : > { %v879_v55 = vadd.f32 %v1620_v37, %v859_v54 }
  0xf1   : > { %v895_v58 = vmax.f32 %v879_v55, 0.0  ;;  %v561_v59 = vpop.f32.mrf.mxu0 }
  0xf2   : > { %v697_v60 = vpop.f32.mrf.mxu1 }
  0xf3   : > { %911 = vst [vmem:[%s1625_s16 + $0x48] sm:$0xff] %v895_v58  ;;  %v698_v61 = vadd.f32 %v697_v60, %v559_v51 }
  0xf5   : > { %v860_v62 = vadd.f32 %v835_v57, %v698_v61  ;;  %v837_v0 = vpop.f32.mrf.mxu2 }
  0xf7   : > { %v880_v63 = vadd.f32 %v1620_v37, %v860_v62 }
  0xf9   : > { %v896_v1 = vmax.f32 %v880_v63, 0.0  ;;  %v564_v2 = vpop.f32.mrf.mxu0 }
  0xfa   : > { %v699_v3 = vpop.f32.mrf.mxu1  ;;  %v703_v6 = vadd.f32 %v1629_v48, %v564_v2 }
  0xfb   : > { %912 = vst [vmem:[%s1625_s16 + $0x50] sm:$0xff] %v896_v1  ;;  %v700_v4 = vadd.f32 %v699_v3, %v561_v59 }
  0xfd   : > { %v861_v5 = vadd.f32 %v837_v0, %v700_v4  ;;  %v840_v8 = vpop.f32.mrf.mxu2 }
  0xfe   : > { %v862_v10 = vadd.f32 %v840_v8, %v703_v6 }
  0xff   : > { %v881_v7 = vadd.f32 %v1620_v37, %v861_v5 }
 0x100   : > { %v882_v11 = vadd.f32 %v1620_v37, %v862_v10 }
 0x101   : > { %v897_v9 = vmax.f32 %v881_v7, 0.0  ;;  %v566_v12 = vpop.f32.mrf.mxu0 }
 0x102   : > { %v898_v13 = vmax.f32 %v882_v11, 0.0  ;;  %v705_v48 = vadd.f32 %v1633_v56, %v566_v12 }
 0x103   : > { %913 = vst [vmem:[%s1625_s16 + $0x58] sm:$0xff] %v897_v9 }
 0x104   : > { %914 = vst [vmem:[%s1625_s16 + $0x60] sm:$0xff] %v898_v13 }
 0x105   : > { %v842_v14 = vpop.f32.mrf.mxu2 }
 0x106   : > { %v863_v15 = vadd.f32 %v842_v14, %v705_v48 }
 0x108   : > { %v883_v16 = vadd.f32 %v1620_v37, %v863_v15 }
 0x10a   : > { %v899_v17 = vmax.f32 %v883_v16, 0.0 }
 0x10c   : > { %915 = vst [vmem:[%s1625_s16 + $0x68] sm:$0xff] %v899_v17 }
 0x10d   : > { %1381 = shalt.err (!%p1378_p5)
}
 0x10e   : > { %s1434_s10 = smov 128   ;;  %s1435_s16 = smov 8  }
 0x10f   : > { %1296 = dma.vmem_to_hbm [thread:$0]  (%p1516_p4), %s933_s23, 2048, %s935_s30, %s919_s27, %s1434_s10, %s1434_s10, %s1435_s16  }
 0x110 PF: > { %p1302_p6 = scmp.ge.s32.totalorder %s1432_s29, 2  ;;  %s949_s22 = sand.u32 1, %s1412_s24  }
 0x111   : > { %s950_s19 = scalar_lea.sflag [#allocation3], %s949_s22 }
 0x112   : > { %p1299_p7 = pnand %p1302_p6, %p1523_p8 }
 0x114   : > { %p1300_p9 = pneg %p1299_p7 }
 0x116   : > { %1407 = dma.done.wait (%p1300_p9), %s950_s19, 2048  }
 0x117   : > { %1409 = vsyncadd (%p1300_p9), %s950_s19, 4294965248  ;;  %s20_s29 = sadd.s32 1, %s1432_s29   ;;  %s1713_s24 = smov %s1416_s25 }
 0x118   : > { %p17_p10 = scmp.ge.s32.totalorder %s20_s29, 4   ;;  %s1714_s25 = smov %s1420_s26 }
 0x119   : > { %s1715_s26 = smov %s1529_s14  ;;  %s1716_s27 = smov %s1428_s28 }
 0x11a   : > { %s1717_s28 = smov %s1719_s9  ;;  %19 = sbr.rel (!%p17_p10) target bundleno = 4 (0x4), region = 101 }
 0x11f   :  { %956 = vsyncpa [#allocation3], 1 }
 0x120   :  { %958 = vsyncpa [#allocation3 + $0x1], 1 }

</bundles_post_ra>
